<compile_context>
chip_gen: v5e
topology: v5e:2x2
jax: 0.10.0
libtpu: 0.0.40
codegen_flags: <defaults>
</compile_context>

<pallas_src>
import math
import functools

import jax
import jax.numpy as jnp
from jax.experimental import pallas as pl
from jax.experimental.pallas import tpu as pltpu


# ----------------------------- kernels ------------------------------------


def _lrelu_bias_kernel(x_ref, b_ref, o_ref, *, neg_slope, scale):
    # x_ref: (tr, ts); b_ref: (tr, 1) or (1, ts) -> broadcasts against x.
    y = x_ref[...] + b_ref[...]
    pos = jnp.asarray(scale, dtype=y.dtype)
    neg = jnp.asarray(neg_slope * scale, dtype=y.dtype)
    o_ref[...] = (y * jnp.where(y >= 0, pos, neg)).astype(o_ref.dtype)


def _lrelu_kernel(x_ref, o_ref, *, neg_slope, scale):
    y = x_ref[...]
    pos = jnp.asarray(scale, dtype=y.dtype)
    neg = jnp.asarray(neg_slope * scale, dtype=y.dtype)
    o_ref[...] = (y * jnp.where(y >= 0, pos, neg)).astype(o_ref.dtype)


# --------------------------- tile selection --------------------------------

_MAX_LANE_TILE = 4096          # lanes per tile (multiple of 128)
_MAX_TILE_BYTES = 2 * 1024 * 1024   # ~2 MiB per x/out tile


def _pick_tiles(R, L, itemsize):
    # Lane tile: full dim if it fits, else a large multiple of 128.
    ts = L if L <= _MAX_LANE_TILE else _MAX_LANE_TILE
    # Row (sublane) tile: fill the byte budget, multiple of 8 (or full dim).
    max_rows = max(8, _MAX_TILE_BYTES // max(1, ts * itemsize))
    if R <= max_rows:
        tr = R
    else:
        tr = (max_rows // 8) * 8
    return tr, ts


# ------------------------------ wrapper ------------------------------------


def fused_leaky_relu(x, bias=None, negative_slope=0.2, scale=math.sqrt(2.0)):
    """x: (B, C, *spatial); bias: (C,) or None. Matches the PyTorch forward."""
    orig_shape = x.shape
    assert x.ndim >= 2, "expected at least (B, C)"
    B, C = x.shape[0], x.shape[1]
    S = 1
    for d in x.shape[2:]:
        S *= d

    # Pick a lane-dense 2-D view (reshape of a contiguous array = free).
    #   spatial >= 128: rows = B*C (bias per row), lanes = spatial
    #   spatial <  128: rows = B, lanes = C*spatial (bias broadcast on lanes)
    row_bias = S >= 128
    if row_bias:
        R, L = B * C, S
    else:
        R, L = B, C * S
    x2 = x.reshape(R, L)

    itemsize = jnp.dtype(x.dtype).itemsize
    tr, ts = _pick_tiles(R, L, itemsize)
    grid = (pl.cdiv(R, tr), pl.cdiv(L, ts))   # ragged edges masked by Pallas

    x_spec = pl.BlockSpec((tr, ts), lambda r, s: (r, s))
    o_spec = pl.BlockSpec((tr, ts), lambda r, s: (r, s))

    neg_slope = float(negative_slope)
    out_scale = float(scale)

    compiler_params = pltpu.CompilerParams(
        dimension_semantics=("parallel", "parallel"),
        vmem_limit_bytes=32 * 1024 * 1024,
    )

    if bias is None:
        kernel = functools.partial(
            _lrelu_kernel, neg_slope=neg_slope, scale=out_scale)
        out2 = pl.pallas_call(
            kernel,
            out_shape=jax.ShapeDtypeStruct((R, L), x.dtype),
            grid_spec=pltpu.PrefetchScalarGridSpec(
                num_scalar_prefetch=0,
                grid=grid,
                in_specs=[x_spec],
                out_specs=o_spec,
            ),
            compiler_params=compiler_params,
        )(x2)
    else:
        b = bias.astype(x.dtype)
        if row_bias:
            # (B*C, 1): one bias value per row, re-fetched only per row tile.
            b2 = jnp.broadcast_to(b[None, :], (B, C)).reshape(R, 1)
            b_spec = pl.BlockSpec((tr, 1), lambda r, s: (r, 0))
        else:
            # (1, C*S): bias pre-broadcast along lanes (tiny array).
            b2 = jnp.broadcast_to(b[:, None], (C, S)).reshape(1, L)
            b_spec = pl.BlockSpec((1, ts), lambda r, s: (0, s))
        kernel = functools.partial(
            _lrelu_bias_kernel, neg_slope=neg_slope, scale=out_scale)
        out2 = pl.pallas_call(
            kernel,
            out_shape=jax.ShapeDtypeStruct((R, L), x.dtype),
            grid_spec=pltpu.PrefetchScalarGridSpec(
                num_scalar_prefetch=0,
                grid=grid,
                in_specs=[x_spec, b_spec],
                out_specs=o_spec,
            ),
            compiler_params=compiler_params,
        )(x2, b2)

    return out2.reshape(orig_shape)


# ----------------------------- reference -----------------------------------


def fused_leaky_relu_ref(x, bias=None, negative_slope=0.2, scale=math.sqrt(2.0)):
    if bias is not None:
        bshape = (1, bias.shape[0]) + (1,) * (x.ndim - 2)
        x = x + bias.reshape(bshape)
    return jnp.where(x >= 0.0, x, x * negative_slope) * scale


if __name__ == "__main__":
    key = jax.random.PRNGKey(0)
    k_x, k_b = jax.random.split(key, 2)

    # NCHW activation + per-channel bias, consistent with the module.
    batch, channel, h, w = 2, 4, 16, 16
    x = jax.random.normal(k_x, (batch, channel, h, w), dtype=jnp.float32)
    bias = jax.random.normal(k_b, (channel,), dtype=jnp.float32)

    # Path 1: with bias (FusedLeakyReLU(channel, bias=True)) -> row-bias layout.
    out = jax.block_until_ready(fused_leaky_relu(x, bias))
    ref = fused_leaky_relu_ref(x, bias)
    assert out.shape == x.shape
    assert jnp.allclose(out, ref, atol=1e-5, rtol=1e-5)

    # Path 2: bias=False variant.
    out_nb = jax.block_until_ready(fused_leaky_relu(x, None))
    ref_nb = fused_leaky_relu_ref(x, None)
    assert jnp.allclose(out_nb, ref_nb, atol=1e-5, rtol=1e-5)

    # Path 3: small-spatial StyleGAN layer (H=W=4) -> lane-bias layout.
    x_s = jax.random.normal(k_x, (2, 8, 4, 4), dtype=jnp.float32)
    bias_s = jax.random.normal(k_b, (8,), dtype=jnp.float32)
    out_s = jax.block_until_ready(fused_leaky_relu(x_s, bias_s))
    ref_s = fused_leaky_relu_ref(x_s, bias_s)
    assert jnp.allclose(out_s, ref_s, atol=1e-5, rtol=1e-5)

    print("KERNEL_OK")
</pallas_src>

<mosaic_0001>
module attributes {stable_mosaic.version = 11 : i64} {
  func.func @_lrelu_bias_kernel(%arg0: i32, %arg1: i32, %arg2: memref<8x256xf32, #tpu.memory_space<vmem>>, %arg3: memref<8x1xf32, #tpu.memory_space<vmem>>, %arg4: memref<8x256xf32, #tpu.memory_space<vmem>>) attributes {dimension_semantics = [#tpu.dimension_semantics<parallel>, #tpu.dimension_semantics<parallel>], iteration_bounds = array<i64: 1, 1>, scalar_prefetch = 0 : i64, scratch_operands = 0 : i64, tpu.core_type = #tpu.core_type<tc>, window_params = [{transform_indices = @transform_0, window_bounds = array<i64: 8, 256>}, {transform_indices = @transform_1, window_bounds = array<i64: 8, 1>}, {transform_indices = @transform_2, window_bounds = array<i64: 8, 256>}]} {
    %c0 = arith.constant 0 : index
    %c0_0 = arith.constant 0 : index
    %0 = vector.load %arg2[%c0, %c0_0] : memref<8x256xf32, #tpu.memory_space<vmem>>, vector<8x256xf32>
    %c0_1 = arith.constant 0 : index
    %c0_2 = arith.constant 0 : index
    %1 = vector.load %arg3[%c0_1, %c0_2] : memref<8x1xf32, #tpu.memory_space<vmem>>, vector<8x1xf32>
    %2 = vector.broadcast %1 : vector<8x1xf32> to vector<8x256xf32>
    %3 = arith.addf %0, %2 : vector<8x256xf32>
    %cst = arith.constant 0.000000e+00 : f32
    %4 = vector.broadcast %cst : f32 to vector<8x256xf32>
    %5 = arith.cmpf oge, %3, %4 : vector<8x256xf32>
    %cst_3 = arith.constant 1.41421354 : f32
    %cst_4 = arith.constant 0.282842726 : f32
    %6 = vector.broadcast %cst_3 : f32 to vector<8x256xf32>
    %7 = vector.broadcast %cst_4 : f32 to vector<8x256xf32>
    %8 = arith.select %5, %6, %7 : vector<8x256xi1>, vector<8x256xf32>
    %9 = arith.mulf %3, %8 : vector<8x256xf32>
    %c0_5 = arith.constant 0 : index
    %c0_6 = arith.constant 0 : index
    %10 = vector.load %arg4[%c0_5, %c0_6] : memref<8x256xf32, #tpu.memory_space<vmem>>, vector<8x256xf32>
    tpu.vector_store %arg4[%c0_5, %c0_6], %9 {strides = array<i32>} : memref<8x256xf32, #tpu.memory_space<vmem>>, vector<8x256xf32>,
    return
  }
  func.func @transform_0(%arg0: i32, %arg1: i32) -> (i32, i32) {
    %c0_i32 = arith.constant 0 : i32
    return %arg0, %arg1 : i32, i32
  }
  func.func @transform_1(%arg0: i32, %arg1: i32) -> (i32, i32) {
    %c0_i32 = arith.constant 0 : i32
    %c0_i32_0 = arith.constant 0 : i32
    return %arg0, %c0_i32 : i32, i32
  }
  func.func @transform_2(%arg0: i32, %arg1: i32) -> (i32, i32) {
    %c0_i32 = arith.constant 0 : i32
    return %arg0, %arg1 : i32, i32
  }
}

</mosaic_0001>

<bundles_post_ra>
// kernel: tpu_custom_call.1
= control target key start
LH: loop header
LB: loop body
LE: loop exit
PB: predicated region body
PF: predicated region fallthrough
CT: control target
= control target key end

     0   :  { %7 = vsyncpa [#allocation3], 0  ;;  %s146_s0 = inlined_call_operand.hbm [shape: f32[8,256], index: 0, kind: input, shape index: {}]   ;;  %s147_s1 = inlined_call_operand.vmem [shape: f32[8,1], index: 1, kind: input, shape index: {}]   ;;  %s148_s2 = inlined_call_operand.hbm [shape: f32[8,256], index: 2, kind: output, shape index: {}]  }
   0x1   :  { %8 = vsyncpa [#allocation4], 0  ;;  %s14_s11 = sshll.u32 %s146_s0, 4  ;;  %s118_s12 = smov [#allocation2]   ;;  %s15_s11 = int_to_ptr.hbm [resolvable:$true] %s14_s11 }
   0x2   :  { %s16_s13 = sshll.u32 %s118_s12, 4  ;;  %s17_s13 = int_to_ptr.vmem [resolvable:$true] %s16_s13 }
   0x3   :  { %19 = dma.hbm_to_vmem [thread:$0]  %s15_s11, 256, %s17_s13, [#allocation3]  }
   0x4   :  { %114 = dma.done.wait [#allocation3], 256  }
   0x5   :  { %115 = vsyncadd [#allocation3], 4294967040  ;;  %v119_v0 = vmov 0   ;;  %v28_v1 = vld [vmem:[%s147_s1] sm:$0xff]  ;;  %v27_v3 = vld [vmem:[#allocation2 + $0x8] sm:$0xff]  ;;  %s120_s0 = smov [#allocation5]  }
   0x6   :  { %65 = vset.pattern.permute.xlu0 %v119_v0  ;;  %v26_v2 = vld [vmem:[#allocation2] sm:$0xff]  ;;  %s49_s16 = sshll.u32 %s120_s0, 4  ;;  %s51_s19 = sshll.u32 %s148_s2, 4  ;;  %v121_v7 = vmov 0.28284273   ;;  %s50_s16 = int_to_ptr.vmem [resolvable:$true] %s49_s16  ;;  %s52_s19 = int_to_ptr.hbm [resolvable:$true] %s51_s19 }
   0x7   :  { %31 = vperm.xlu0 %65, %v28_v1  }
  0x79   :  { %v32_v4 = vpop.permute.xlu0 %31 }
  0x7a   :  { %v34_v5 = vadd.f32 %v32_v4, %v26_v2  ;;  %v35_v6 = vadd.f32 %v32_v4, %v27_v3 }
  0x7c   :  { %vm36_vm0 = vcmp.ge.f32.partialorder %v34_v5, 0.0  ;;  %vm37_vm1 = vcmp.ge.f32.partialorder %v35_v6, 0.0 }
  0x7d   :  { %v38_v8 = vsel %vm36_vm0, 1.4142135, %v121_v7  ;;  %v39_v9 = vsel %vm37_vm1, 1.4142135, %v121_v7 }
  0x7e   :  { %v40_v10 = vmul.f32 %v38_v8, %v34_v5  ;;  %v41_v11 = vmul.f32 %v39_v9, %v35_v6 }
  0x80   :  { %42 = vst [vmem:[#allocation5] sm:$0xff] %v40_v10 }
  0x81   :  { %43 = vst [vmem:[#allocation5 + $0x8] sm:$0xff] %v41_v11 }
  0x82   :  { %54 = dma.vmem_to_hbm [thread:$0]  %s50_s16, 256, %s52_s19, [#allocation4]  }
  0x83   :  { %116 = dma.done.wait [#allocation4], 256  }
  0x84   :  { %117 = vsyncadd [#allocation4], 4294967040 }
  0x85   :  { %59 = vsyncpa [#allocation3], 1 }
  0x86   :  { %60 = vsyncpa [#allocation4], 1 }

</bundles_post_ra>
